<compile_context>
chip_gen: v6e
topology: v6e:2x2x1
jax: 0.10.0
libtpu: 0.0.40
codegen_flags: <defaults>
</compile_context>

<pallas_src>
import functools
import math

import jax
import jax.numpy as jnp
from jax.experimental import pallas as pl
from jax.experimental.pallas import tpu as pltpu


def _round_up(x, m):
    return ((x + m - 1) // m) * m


def _pad2d(x, rows, cols):
    r, c = x.shape
    if r == rows and c == cols:
        return x
    return jnp.pad(x, ((0, rows - r), (0, cols - c)))


def _choose_tile(w):
    # Largest power-of-two tile in [128, 1024] that still keeps >= 2 row tiles
    # (v7x megacore: both TensorCores get work on the "parallel" axis).
    for t in (1024, 512, 256, 128):
        if w >= 2 * t:
            return t
    return 128


# ----------------------------------------------------------------------------
# Kernel 1 (fused gcn1 + relu + gcn2 projection):
#   S2 row-tile = relu( sum_k adj[i,k] @ W1[k] + b1 ) @ W2
# grid = (row tiles of adj, K tiles over adj columns)
# ----------------------------------------------------------------------------
def _gcn_layer1_fused_kernel(adj_ref, w1_ref, b1_ref, w2_ref, s2_ref, acc_ref):
    k = pl.program_id(1)

    @pl.when(k == 0)
    def _():
        acc_ref[...] = jnp.zeros_like(acc_ref)

    acc_ref[...] += jnp.dot(adj_ref[...], w1_ref[...],
                            preferred_element_type=jnp.float32)

    @pl.when(k == pl.num_programs(1) - 1)
    def _():
        h1 = jnp.maximum(acc_ref[...] + b1_ref[...], 0.0)       # bias + ReLU once
        s2 = jnp.dot(h1.astype(w2_ref.dtype), w2_ref[...],
                     preferred_element_type=jnp.float32)
        s2_ref[...] = s2.astype(s2_ref.dtype)


# ----------------------------------------------------------------------------
# Kernel 2: out row-tile = sum_k adj[i,k] @ S2[k] + b2
# Output block index (i, 0) is constant across k => out_ref stays VMEM-resident
# and doubles as the accumulator (no scratch needed).
# ----------------------------------------------------------------------------
def _gcn_layer2_kernel(adj_ref, s2_ref, b2_ref, out_ref):
    k = pl.program_id(1)

    @pl.when(k == 0)
    def _():
        out_ref[...] = jnp.zeros_like(out_ref)

    out_ref[...] += jnp.dot(adj_ref[...], s2_ref[...],
                            preferred_element_type=jnp.float32)

    @pl.when(k == pl.num_programs(1) - 1)
    def _():
        out_ref[...] += b2_ref[...]


# ----------------------------------------------------------------------------
# Wrapper
# ----------------------------------------------------------------------------
@functools.partial(
    jax.jit,
    static_argnames=("tm", "tk", "compute_dtype", "vmem_limit_bytes",
                     "trim_output"))
def gcn_forward(adj, w1, b1, w2, b2, *, tm=None, tk=None,
                compute_dtype=jnp.bfloat16, vmem_limit_bytes=None,
                trim_output=True):
    w = adj.shape[0]
    emb = w1.shape[1]
    out_dim = w2.shape[1]

    if tm is None:
        tm = _choose_tile(w)
    if tk is None:
        tk = tm

    # Pad graph dim to a tile multiple (zero rows/cols are mathematically inert)
    w_pad = _round_up(w, math.lcm(tm, tk))
    # Lane-dense padding of the narrow feature dims (zeros -> exact math).
    emb_pad = _round_up(emb, 128)
    out_pad = _round_up(out_dim, 128)

    # Cast adj only if the caller did not already store it in the compute dtype
    # (raw {0,1,2} adjacency is exact in bf16; pre-cast upstream to avoid a
    # per-call HBM convert pass).
    if adj.dtype != compute_dtype:
        adj = adj.astype(compute_dtype)
    adj_p = _pad2d(adj, w_pad, w_pad)

    w1p = _pad2d(w1, w_pad, emb_pad).astype(compute_dtype)
    b1p = _pad2d(b1, 1, emb_pad).astype(jnp.float32)
    w2p = _pad2d(w2, emb_pad, out_pad).astype(compute_dtype)
    b2p = _pad2d(b2, 1, out_pad).astype(jnp.float32)

    grid = (w_pad // tm, w_pad // tk)

    # Raise the scoped VMEM limit only when large tiles actually need it;
    # keep the cap at 64 MiB so the config stays legal on v7x.
    if vmem_limit_bytes is None:
        bs = jnp.dtype(compute_dtype).itemsize
        est = (2 * tm * tk * bs          # adj tile, double-buffered
               + 2 * tk * emb_pad * bs   # W1 rows, double-buffered
               + emb_pad * out_pad * bs  # W2 (resident)
               + tm * emb_pad * 4        # f32 accumulator scratch (kernel 1)
               + 2 * tm * out_pad * 4    # S2 / out tile, double-buffered
               + 2 * tk * out_pad * bs)  # S2 rows (kernel 2), double-buffered
        if est > 12 * 1024 * 1024:
            vmem_limit_bytes = int(min(2 * est, 64 * 1024 * 1024))

    cp = pltpu.CompilerParams(
        dimension_semantics=("parallel", "arbitrary"),
        vmem_limit_bytes=vmem_limit_bytes)

    # S2 in the compute dtype (bf16 by default) halves its HBM round trip.
    s2_dtype = compute_dtype

    # ---- fused layer 1 + relu + W2 projection -------------------------------
    s2 = pl.pallas_call(
        _gcn_layer1_fused_kernel,
        out_shape=jax.ShapeDtypeStruct((w_pad, out_pad), s2_dtype),
        grid_spec=pltpu.PrefetchScalarGridSpec(
            num_scalar_prefetch=0,
            grid=grid,
            in_specs=[
                pl.BlockSpec((tm, tk), lambda i, k: (i, k)),            # adj tile
                pl.BlockSpec((tk, emb_pad), lambda i, k: (k, 0)),       # W1 rows
                pl.BlockSpec((1, emb_pad), lambda i, k: (0, 0)),        # b1
                pl.BlockSpec((emb_pad, out_pad), lambda i, k: (0, 0)),  # W2
            ],
            out_specs=pl.BlockSpec((tm, out_pad), lambda i, k: (i, 0)),
            scratch_shapes=[pltpu.VMEM((tm, emb_pad), jnp.float32)],
        ),
        compiler_params=cp,
    )(adj_p, w1p, b1p, w2p)

    # Dropout(p=0.3): nn.Dropout is identity in eval mode; reproduced as such.
    # TODO(synk): training-mode dropout (scaled Bernoulli via pltpu.prng_*)
    # not implemented -- the torch RNG stream cannot be reproduced anyway.

    # ---- layer 2: out = adj @ S2 + b2 ---------------------------------------
    out_p = pl.pallas_call(
        _gcn_layer2_kernel,
        out_shape=jax.ShapeDtypeStruct((w_pad, out_pad), jnp.float32),
        grid_spec=pltpu.PrefetchScalarGridSpec(
            num_scalar_prefetch=0,
            grid=grid,
            in_specs=[
                pl.BlockSpec((tm, tk), lambda i, k: (i, k)),            # adj tile
                pl.BlockSpec((tk, out_pad), lambda i, k: (k, 0)),       # S2 rows
                pl.BlockSpec((1, out_pad), lambda i, k: (0, 0)),        # b2
            ],
            out_specs=pl.BlockSpec((tm, out_pad), lambda i, k: (i, 0)),
        ),
        compiler_params=cp,
    )(adj_p, s2, b2p)

    if trim_output:
        return out_p[:w, :out_dim]
    return out_p   # lane-padded (w_pad, out_pad) slab; skips the XLA slice


# ----------------------------------------------------------------------------
# Deterministic parameter init (Kipf GraphConvolution: U(-stdv, stdv),
# stdv = 1/sqrt(out_features)).
# ----------------------------------------------------------------------------
def init_gcn_params(key, w, emb_dim, out_dim=64):
    k1, k2, k3, k4 = jax.random.split(key, 4)
    stdv1 = 1.0 / jnp.sqrt(emb_dim)
    stdv2 = 1.0 / jnp.sqrt(out_dim)
    w1 = jax.random.uniform(k1, (w, emb_dim), jnp.float32, -stdv1, stdv1)
    b1 = jax.random.uniform(k2, (1, emb_dim), jnp.float32, -stdv1, stdv1)
    w2 = jax.random.uniform(k3, (emb_dim, out_dim), jnp.float32, -stdv2, stdv2)
    b2 = jax.random.uniform(k4, (1, out_dim), jnp.float32, -stdv2, stdv2)
    return w1, b1, w2, b2


if __name__ == "__main__":
    # Small shapes: graph size w=256 nodes, emb_dim=64, gcn2 out=64.
    # Auto tiling picks tm=tk=128 -> grid (2, 2): exercises both the parallel
    # row axis (2 tiles for v7x megacore) and the K-reduction accumulator path.
    W = 256
    EMB = 64
    OUT = 64

    key = jax.random.PRNGKey(0)
    k_adj, k_par = jax.random.split(key)

    # Symmetric "adjacency" with self loops (random graph, values in {0,1,2}).
    a = jax.random.uniform(k_adj, (W, W), jnp.float32)
    adj = ((a + a.T) * 0.5 > 0.8).astype(jnp.float32) + jnp.eye(W, dtype=jnp.float32)

    w1, b1, w2, b2 = init_gcn_params(k_par, W, EMB, OUT)

    # Pure-JAX reference (eval-mode dropout == identity, X = eye -> X@W1 == W1).
    h1_ref = jnp.maximum(adj @ w1 + b1, 0.0)
    ref = adj @ (h1_ref @ w2) + b2

    # f32 path: tight correctness check.
    out_f32 = gcn_forward(adj, w1, b1, w2, b2, compute_dtype=jnp.float32)
    out_f32 = jax.block_until_ready(out_f32)
    assert out_f32.shape == (W, OUT)
    assert jnp.allclose(out_f32, ref, atol=1e-4, rtol=1e-4), \
        float(jnp.max(jnp.abs(out_f32 - ref)))

    # Default (bf16) path: adj {0,1,2} is exact in bf16; cast once up front so
    # the wrapper does not pay a per-call convert.  Weights lose precision, so
    # compare with a loose tolerance.
    adj_bf16 = adj.astype(jnp.bfloat16)
    out_bf16 = gcn_forward(adj_bf16, w1, b1, w2, b2)
    out_bf16 = jax.block_until_ready(out_bf16)
    assert out_bf16.shape == (W, OUT)
    assert jnp.allclose(out_bf16, ref, atol=0.2, rtol=0.05), \
        float(jnp.max(jnp.abs(out_bf16 - ref)))

    print("KERNEL_OK")
</pallas_src>

<mosaic_0001>
module attributes {stable_mosaic.version = 11 : i64} {
  func.func @_gcn_layer2_kernel(%arg0: i32, %arg1: i32, %arg2: memref<128x128xf32, #tpu.memory_space<vmem>>, %arg3: memref<128x128xf32, #tpu.memory_space<vmem>>, %arg4: memref<1x128xf32, #tpu.memory_space<vmem>>, %arg5: memref<128x128xf32, #tpu.memory_space<vmem>>) attributes {dimension_semantics = [#tpu.dimension_semantics<parallel>, #tpu.dimension_semantics<arbitrary>], iteration_bounds = array<i64: 2, 2>, scalar_prefetch = 0 : i64, scratch_operands = 0 : i64, tpu.core_type = #tpu.core_type<tc>, window_params = [{transform_indices = @transform_0, window_bounds = array<i64: 128, 128>}, {transform_indices = @transform_1, window_bounds = array<i64: 128, 128>}, {pipeline_mode = #tpu.pipeline_mode<synchronous>, transform_indices = @transform_2, window_bounds = array<i64: 1, 128>}, {transform_indices = @transform_3, window_bounds = array<i64: 128, 128>}]} {
    %c0_i32 = arith.constant 0 : i32
    %0 = arith.cmpi eq, %arg1, %c0_i32 : i32
    %1 = arith.extui %0 : i1 to i32
    %c0_i32_0 = arith.constant 0 : i32
    %2 = arith.cmpi ne, %1, %c0_i32_0 : i32
    scf.if %2 {
      %cst_9 = arith.constant 0.000000e+00 : f32
      %12 = vector.broadcast %cst_9 : f32 to vector<128x128xf32>
      %c0_10 = arith.constant 0 : index
      %c0_11 = arith.constant 0 : index
      %13 = vector.load %arg5[%c0_10, %c0_11] : memref<128x128xf32, #tpu.memory_space<vmem>>, vector<128x128xf32>
      tpu.vector_store %arg5[%c0_10, %c0_11], %12 {strides = array<i32>} : memref<128x128xf32, #tpu.memory_space<vmem>>, vector<128x128xf32>,
    } else {
    }
    %c0 = arith.constant 0 : index
    %c0_1 = arith.constant 0 : index
    %3 = vector.load %arg5[%c0, %c0_1] : memref<128x128xf32, #tpu.memory_space<vmem>>, vector<128x128xf32>
    %c0_2 = arith.constant 0 : index
    %c0_3 = arith.constant 0 : index
    %4 = vector.load %arg2[%c0_2, %c0_3] : memref<128x128xf32, #tpu.memory_space<vmem>>, vector<128x128xf32>
    %c0_4 = arith.constant 0 : index
    %c0_5 = arith.constant 0 : index
    %5 = vector.load %arg3[%c0_4, %c0_5] : memref<128x128xf32, #tpu.memory_space<vmem>>, vector<128x128xf32>
    %cst = arith.constant dense<0.000000e+00> : vector<128x128xf32>
    %6 = tpu.matmul %4, %5, %cst {dimension_numbers = #tpu.dot_dimension_numbers<[1], [0], [0], [1], [0, 0, 1, 1], [], []>} : vector<128x128xf32>, vector<128x128xf32>, vector<128x128xf32> -> vector<128x128xf32>
    %7 = arith.addf %3, %6 : vector<128x128xf32>
    %c0_6 = arith.constant 0 : index
    %c0_7 = arith.constant 0 : index
    %8 = vector.load %arg5[%c0_6, %c0_7] : memref<128x128xf32, #tpu.memory_space<vmem>>, vector<128x128xf32>
    tpu.vector_store %arg5[%c0_6, %c0_7], %7 {strides = array<i32>} : memref<128x128xf32, #tpu.memory_space<vmem>>, vector<128x128xf32>,
    %c1_i32 = arith.constant 1 : i32
    %9 = arith.cmpi eq, %arg1, %c1_i32 : i32
    %10 = arith.extui %9 : i1 to i32
    %c0_i32_8 = arith.constant 0 : i32
    %11 = arith.cmpi ne, %10, %c0_i32_8 : i32
    scf.if %11 {
      %c0_9 = arith.constant 0 : index
      %c0_10 = arith.constant 0 : index
      %12 = vector.load %arg5[%c0_9, %c0_10] : memref<128x128xf32, #tpu.memory_space<vmem>>, vector<128x128xf32>
      %c0_11 = arith.constant 0 : index
      %c0_12 = arith.constant 0 : index
      %13 = vector.load %arg4[%c0_11, %c0_12] : memref<1x128xf32, #tpu.memory_space<vmem>>, vector<1x128xf32>
      %14 = vector.broadcast %13 : vector<1x128xf32> to vector<128x128xf32>
      %15 = arith.addf %12, %14 : vector<128x128xf32>
      %c0_13 = arith.constant 0 : index
      %c0_14 = arith.constant 0 : index
      %16 = vector.load %arg5[%c0_13, %c0_14] : memref<128x128xf32, #tpu.memory_space<vmem>>, vector<128x128xf32>
      tpu.vector_store %arg5[%c0_13, %c0_14], %15 {strides = array<i32>} : memref<128x128xf32, #tpu.memory_space<vmem>>, vector<128x128xf32>,
    } else {
    }
    return
  }
  func.func @transform_0(%arg0: i32, %arg1: i32) -> (i32, i32) {
    %c0_i32 = arith.constant 0 : i32
    return %arg0, %arg1 : i32, i32
  }
  func.func @transform_1(%arg0: i32, %arg1: i32) -> (i32, i32) {
    %c0_i32 = arith.constant 0 : i32
    %c0_i32_0 = arith.constant 0 : i32
    return %arg1, %c0_i32 : i32, i32
  }
  func.func @transform_2(%arg0: i32, %arg1: i32) -> (i32, i32) {
    %c0_i32 = arith.constant 0 : i32
    %c0_i32_0 = arith.constant 0 : i32
    %c0_i32_1 = arith.constant 0 : i32
    return %c0_i32, %c0_i32_0 : i32, i32
  }
  func.func @transform_3(%arg0: i32, %arg1: i32) -> (i32, i32) {
    %c0_i32 = arith.constant 0 : i32
    %c0_i32_0 = arith.constant 0 : i32
    return %arg0, %c0_i32 : i32, i32
  }
}

module attributes {stable_mosaic.version = 11 : i64} {
  func.func @_gcn_layer1_fused_kernel(%arg0: i32, %arg1: i32, %arg2: memref<128x128xf32, #tpu.memory_space<vmem>>, %arg3: memref<128x128xf32, #tpu.memory_space<vmem>>, %arg4: memref<1x128xf32, #tpu.memory_space<vmem>>, %arg5: memref<128x128xf32, #tpu.memory_space<vmem>>, %arg6: memref<128x128xf32, #tpu.memory_space<vmem>>, %arg7: memref<128x128xf32, #tpu.memory_space<vmem>>) attributes {dimension_semantics = [#tpu.dimension_semantics<parallel>, #tpu.dimension_semantics<arbitrary>], iteration_bounds = array<i64: 2, 2>, scalar_prefetch = 0 : i64, scratch_operands = 1 : i64, tpu.core_type = #tpu.core_type<tc>, window_params = [{transform_indices = @transform_0, window_bounds = array<i64: 128, 128>}, {transform_indices = @transform_1, window_bounds = array<i64: 128, 128>}, {pipeline_mode = #tpu.pipeline_mode<synchronous>, transform_indices = @transform_2, window_bounds = array<i64: 1, 128>}, {pipeline_mode = #tpu.pipeline_mode<synchronous>, transform_indices = @transform_3, window_bounds = array<i64: 128, 128>}, {transform_indices = @transform_4, window_bounds = array<i64: 128, 128>}]} {
    %c0_i32 = arith.constant 0 : i32
    %0 = arith.cmpi eq, %arg1, %c0_i32 : i32
    %1 = arith.extui %0 : i1 to i32
    %c0_i32_0 = arith.constant 0 : i32
    %2 = arith.cmpi ne, %1, %c0_i32_0 : i32
    scf.if %2 {
      %cst_9 = arith.constant 0.000000e+00 : f32
      %12 = vector.broadcast %cst_9 : f32 to vector<128x128xf32>
      %c0_10 = arith.constant 0 : index
      %c0_11 = arith.constant 0 : index
      %13 = vector.load %arg7[%c0_10, %c0_11] : memref<128x128xf32, #tpu.memory_space<vmem>>, vector<128x128xf32>
      tpu.vector_store %arg7[%c0_10, %c0_11], %12 {strides = array<i32>} : memref<128x128xf32, #tpu.memory_space<vmem>>, vector<128x128xf32>,
    } else {
    }
    %c0 = arith.constant 0 : index
    %c0_1 = arith.constant 0 : index
    %3 = vector.load %arg7[%c0, %c0_1] : memref<128x128xf32, #tpu.memory_space<vmem>>, vector<128x128xf32>
    %c0_2 = arith.constant 0 : index
    %c0_3 = arith.constant 0 : index
    %4 = vector.load %arg2[%c0_2, %c0_3] : memref<128x128xf32, #tpu.memory_space<vmem>>, vector<128x128xf32>
    %c0_4 = arith.constant 0 : index
    %c0_5 = arith.constant 0 : index
    %5 = vector.load %arg3[%c0_4, %c0_5] : memref<128x128xf32, #tpu.memory_space<vmem>>, vector<128x128xf32>
    %cst = arith.constant dense<0.000000e+00> : vector<128x128xf32>
    %6 = tpu.matmul %4, %5, %cst {dimension_numbers = #tpu.dot_dimension_numbers<[1], [0], [0], [1], [0, 0, 1, 1], [], []>} : vector<128x128xf32>, vector<128x128xf32>, vector<128x128xf32> -> vector<128x128xf32>
    %7 = arith.addf %3, %6 : vector<128x128xf32>
    %c0_6 = arith.constant 0 : index
    %c0_7 = arith.constant 0 : index
    %8 = vector.load %arg7[%c0_6, %c0_7] : memref<128x128xf32, #tpu.memory_space<vmem>>, vector<128x128xf32>
    tpu.vector_store %arg7[%c0_6, %c0_7], %7 {strides = array<i32>} : memref<128x128xf32, #tpu.memory_space<vmem>>, vector<128x128xf32>,
    %c1_i32 = arith.constant 1 : i32
    %9 = arith.cmpi eq, %arg1, %c1_i32 : i32
    %10 = arith.extui %9 : i1 to i32
    %c0_i32_8 = arith.constant 0 : i32
    %11 = arith.cmpi ne, %10, %c0_i32_8 : i32
    scf.if %11 {
      %c0_9 = arith.constant 0 : index
      %c0_10 = arith.constant 0 : index
      %12 = vector.load %arg7[%c0_9, %c0_10] : memref<128x128xf32, #tpu.memory_space<vmem>>, vector<128x128xf32>
      %c0_11 = arith.constant 0 : index
      %c0_12 = arith.constant 0 : index
      %13 = vector.load %arg4[%c0_11, %c0_12] : memref<1x128xf32, #tpu.memory_space<vmem>>, vector<1x128xf32>
      %14 = vector.broadcast %13 : vector<1x128xf32> to vector<128x128xf32>
      %15 = arith.addf %12, %14 : vector<128x128xf32>
      %cst_13 = arith.constant 0.000000e+00 : f32
      %16 = vector.broadcast %cst_13 : f32 to vector<128x128xf32>
      %17 = arith.maximumf %15, %16 : vector<128x128xf32>
      %c0_14 = arith.constant 0 : index
      %c0_15 = arith.constant 0 : index
      %18 = vector.load %arg5[%c0_14, %c0_15] : memref<128x128xf32, #tpu.memory_space<vmem>>, vector<128x128xf32>
      %cst_16 = arith.constant dense<0.000000e+00> : vector<128x128xf32>
      %19 = tpu.matmul %17, %18, %cst_16 {dimension_numbers = #tpu.dot_dimension_numbers<[1], [0], [0], [1], [0, 0, 1, 1], [], []>} : vector<128x128xf32>, vector<128x128xf32>, vector<128x128xf32> -> vector<128x128xf32>
      %c0_17 = arith.constant 0 : index
      %c0_18 = arith.constant 0 : index
      %20 = vector.load %arg6[%c0_17, %c0_18] : memref<128x128xf32, #tpu.memory_space<vmem>>, vector<128x128xf32>
      tpu.vector_store %arg6[%c0_17, %c0_18], %19 {strides = array<i32>} : memref<128x128xf32, #tpu.memory_space<vmem>>, vector<128x128xf32>,
    } else {
    }
    return
  }
  func.func @transform_0(%arg0: i32, %arg1: i32) -> (i32, i32) {
    %c0_i32 = arith.constant 0 : i32
    return %arg0, %arg1 : i32, i32
  }
  func.func @transform_1(%arg0: i32, %arg1: i32) -> (i32, i32) {
    %c0_i32 = arith.constant 0 : i32
    %c0_i32_0 = arith.constant 0 : i32
    return %arg1, %c0_i32 : i32, i32
  }
  func.func @transform_2(%arg0: i32, %arg1: i32) -> (i32, i32) {
    %c0_i32 = arith.constant 0 : i32
    %c0_i32_0 = arith.constant 0 : i32
    %c0_i32_1 = arith.constant 0 : i32
    return %c0_i32, %c0_i32_0 : i32, i32
  }
  func.func @transform_3(%arg0: i32, %arg1: i32) -> (i32, i32) {
    %c0_i32 = arith.constant 0 : i32
    %c0_i32_0 = arith.constant 0 : i32
    %c0_i32_1 = arith.constant 0 : i32
    return %c0_i32, %c0_i32_0 : i32, i32
  }
  func.func @transform_4(%arg0: i32, %arg1: i32) -> (i32, i32) {
    %c0_i32 = arith.constant 0 : i32
    %c0_i32_0 = arith.constant 0 : i32
    return %arg0, %c0_i32 : i32, i32
  }
}

</mosaic_0001>

<bundles_post_ra>
// kernel: gcn_forward.2
= control target key start
LH: loop header
LB: loop body
LE: loop exit
PB: predicated region body
PF: predicated region fallthrough
CT: control target
= control target key end

     0   :  { %s1302_s15 = smov 0   ;;  %s1304_s16 = smov 0   ;;  %s1537_s0 = inlined_call_operand.vmem [shape: f32[256,256], index: 0, kind: input, shape index: {}]   ;;  %s1538_s1 = inlined_call_operand.vmem [shape: f32[256,128], index: 1, kind: input, shape index: {}]   ;;  %s1539_s2 = inlined_call_operand.vmem [shape: f32[1,128], index: 2, kind: input, shape index: {}]   ;;  %s1540_s3 = inlined_call_operand.vmem [shape: f32[128,128], index: 3, kind: input, shape index: {}]   ;;  %s1541_s4 = inlined_call_operand.vmem [shape: f32[256,128], index: 4, kind: output, shape index: {}]  }
   0x1   :  { %s1306_s17 = smov 0   ;;  %s1308_s18 = smov 0  }
   0x2   :  { %s1310_s19 = smov 0   ;;  %s1312_s20 = smov 0  }
   0x3   :  { %s1314_s21 = smov 0  }
   0x4 LB: > { %s23_s22 = sadd.s32 1, %s1266_s19  ;;  %s26_s23 = sadd.s32 1, %s1270_s20  ;;  %s1274_s21 = sphi %s1314_s21, %s14_s21   ;;  %s1270_s20 = sphi %s1312_s20, %s1547_s20   ;;  %s1266_s19 = sphi %s1310_s19, %s1546_s19   ;;  %s1262_s18 = sphi %s1308_s18, %s1545_s18   ;;  %s1258_s17 = sphi %s1306_s17, %s1544_s17   ;;  %s1254_s16 = sphi %s1304_s16, %s1543_s16   ;;  %s1250_s15 = sphi %s1302_s15, %s1542_s15  }
   0x5   : > { %p24_p0 = scmp.ge.s32.totalorder %s23_s22, 2  ;;  %p42_p1 = scmp.ne.s32.totalorder %s1254_s16, %s1250_s15 }
   0x6   : > { %p43_p2 = scmp.eq.s32.totalorder %s1274_s21, 0  ;;  %s35_s27 = sadd.s32 1, %s1254_s16 }
   0x7   : > { %s1549_s22 = smov (%p24_p0, %s23_s22), 0  ;;  %s1551_s23 = smov (!%p24_p0, %s26_s23), %s1270_s20 }
   0x8   : > { %p44_p3 = por %p43_p2, %p42_p1  ;;  %p28_p4 = scmp.ge.s32.totalorder %s1551_s23, 2 }
   0x9   : > { %s31_s24 = ssub.s32 %s1266_s19, %s1549_s22  ;;  %p906_p6 = scmp.ge.s32.totalorder %s1274_s21, 4 }
   0xa   : > { %s1553_s23 = smov (%p28_p4, %s1551_s23), 0 }
   0xb   : > { %s30_s25 = ssub.s32 %s1270_s20, %s1553_s23  ;;  %168 = sbr.rel (%p906_p6) target bundleno = 30 (0x1e), region = 24 }
   0xc   : > { %s32_s26 = sor.u32 %s31_s24, %s30_s25 }
   0xd   : > { %p33_p5 = scmp.eq.s32.totalorder %s32_s26, 0 }
   0xf   : > { %s1353_s28 = scalar_select %p33_p5, %s1254_s16, %s35_s27  }
  0x10   : > { %171 = sbr.rel (!%p44_p3) target bundleno = 30 (0x1e), region = 28  ;;  %s173_s29 = sand.u32 (%p44_p3), 1, %s1254_s16  }
  0x11   : > { %s922_s30 = sshll.u32 (%p44_p3), %s1270_s20, 5  ;;  %s907_s5 = sshll.u32 (%p44_p3), %s173_s29, 7 }
  0x12   : > { %s178_s6 = sadd.s32 (%p44_p3), %s1266_s19, %s922_s30  ;;  %s175_s11 = scalar_lea.vmem (%p44_p3), [#allocation3], %s907_s5 }
  0x13   : > { %s910_s7 = sshll.u32 (%p44_p3), %s178_s6, 3 }
  0x14   : > { %s1362_s10 = scalar_lea.vmem (%p44_p3), %s1537_s0, %s910_s7 }
  0x15   : > { %v239_v0 = vld [vmem:[%s1362_s10] sm:$0xff]  ;;  %v241_v1 = vld [vmem:[%s1362_s10 + $0x10] sm:$0xff] }
  0x16   : > { %v243_v2 = vld [vmem:[%s1362_s10 + $0x20] sm:$0xff]  ;;  %240 = vst [vmem:[%s175_s11] sm:$0xff] %v239_v0  ;;  %242 = vst [vmem:[%s175_s11 + $0x8] sm:$0xff] %v241_v1  ;;  %v245_v3 = vld [vmem:[%s1362_s10 + $0x30] sm:$0xff] }
  0x17   : > { %244 = vst [vmem:[%s175_s11 + $0x10] sm:$0xff] %v243_v2  ;;  %v247_v4 = vld [vmem:[%s1362_s10 + $0x40] sm:$0xff]  ;;  %v249_v5 = vld [vmem:[%s1362_s10 + $0x50] sm:$0xff]  ;;  %246 = vst [vmem:[%s175_s11 + $0x18] sm:$0xff] %v245_v3 }
  0x18   : > { %248 = vst [vmem:[%s175_s11 + $0x20] sm:$0xff] %v247_v4  ;;  %250 = vst [vmem:[%s175_s11 + $0x28] sm:$0xff] %v249_v5  ;;  %v251_v6 = vld [vmem:[%s1362_s10 + $0x60] sm:$0xff]  ;;  %v253_v7 = vld [vmem:[%s1362_s10 + $0x70] sm:$0xff] }
  0x19   : > { %v255_v8 = vld [vmem:[%s1362_s10 + $0x80] sm:$0xff]  ;;  %252 = vst [vmem:[%s175_s11 + $0x30] sm:$0xff] %v251_v6  ;;  %254 = vst [vmem:[%s175_s11 + $0x38] sm:$0xff] %v253_v7  ;;  %v257_v9 = vld [vmem:[%s1362_s10 + $0x90] sm:$0xff] }
  0x1a   : > { %256 = vst [vmem:[%s175_s11 + $0x40] sm:$0xff] %v255_v8  ;;  %v259_v10 = vld [vmem:[%s1362_s10 + $0xa0] sm:$0xff]  ;;  %v261_v11 = vld [vmem:[%s1362_s10 + $0xb0] sm:$0xff]  ;;  %258 = vst [vmem:[%s175_s11 + $0x48] sm:$0xff] %v257_v9 }
  0x1b   : > { %260 = vst [vmem:[%s175_s11 + $0x50] sm:$0xff] %v259_v10  ;;  %262 = vst [vmem:[%s175_s11 + $0x58] sm:$0xff] %v261_v11  ;;  %v263_v12 = vld [vmem:[%s1362_s10 + $0xc0] sm:$0xff]  ;;  %v265_v13 = vld [vmem:[%s1362_s10 + $0xd0] sm:$0xff] }
  0x1c   : > { %v267_v14 = vld [vmem:[%s1362_s10 + $0xe0] sm:$0xff]  ;;  %264 = vst [vmem:[%s175_s11 + $0x60] sm:$0xff] %v263_v12  ;;  %266 = vst [vmem:[%s175_s11 + $0x68] sm:$0xff] %v265_v13  ;;  %v269_v15 = vld [vmem:[%s1362_s10 + $0xf0] sm:$0xff] }
  0x1d   : > { %268 = vst [vmem:[%s175_s11 + $0x70] sm:$0xff] %v267_v14  ;;  %270 = vst [vmem:[%s175_s11 + $0x78] sm:$0xff] %v269_v15 }
  0x1e PF: > { %p911_p7 = scmp.ge.s32.totalorder %s1274_s21, 1  ;;  %p284_p8 = scmp.lt.s32.totalorder %s1274_s21, 5 }
  0x20   : > { %p285_p9 = pnand %p911_p7, %p284_p8 }
  0x21   : > { %s291_s12 = sand.u32 (!%p285_p9), 1, %s1250_s15   ;;  %s913_s13 = sshll.u32 (!%p285_p9), %s1258_s17, 4 }
  0x22   : > { %288 = sbr.rel (%p285_p9) target bundleno = 542 (0x21e), region = 70  ;;  %s912_s14 = sshll.u32 (!%p285_p9), %s291_s12, 7 }
  0x23   : > { %p323_p10 = scmp.lt.s32.totalorder (!%p285_p9), %s913_s13, 31  ;;  %s915_s24 = sshll.u32 (!%p285_p9), %s1262_s18, 4 }
  0x24   : > { %p329_p11 = scmp.lt.s32.totalorder (!%p285_p9), %s915_s24, 31  ;;  %s1395_s15 = scalar_lea.vmem (!%p285_p9), [#allocation3], %s912_s14 }
  0x25   : > { %p917_p12 = scmp.ne.s32.totalorder (!%p285_p9), %s1258_s17, 0 }
  0x27   : > { %s1555_s13 = smov (!%p323_p10, %s913_s13), 31  ;;  %s1557_s24 = smov (!%p329_p11, %s915_s24), 31 }
  0x28   : > { %s914_s25 = sshll.u32 %s1555_s13, 3  ;;  %s916_s30 = sshll.u32 %s1557_s24, 3 }
  0x29   : > { %s1388_s29 = scalar_lea.vmem %s1538_s1, %s914_s25  ;;  %s1393_s7 = scalar_lea.vmem %s1541_s4, %s916_s30 }
  0x2a   : > { %337 = sbr.rel (%p917_p12) target bundleno = 56 (0x38), region = 78 }
  0x2f   : > { %v1276_v16 = vmov 0.0  }
  0x30   : > { %338 = vst [vmem:[#allocation2 + $0x30] sm:$0xff] %v1276_v16  ;;  %339 = vst [vmem:[#allocation2] sm:$0xff] %v1276_v16 }
  0x31   : > { %340 = vst [vmem:[#allocation2 + $0x58] sm:$0xff] %v1276_v16  ;;  %341 = vst [vmem:[#allocation2 + $0x18] sm:$0xff] %v1276_v16 }
  0x32   : > { %342 = vst [vmem:[#allocation2 + $0x50] sm:$0xff] %v1276_v16  ;;  %343 = vst [vmem:[#allocation2 + $0x68] sm:$0xff] %v1276_v16 }
  0x33   : > { %344 = vst [vmem:[#allocation2 + $0x8] sm:$0xff] %v1276_v16  ;;  %345 = vst [vmem:[#allocation2 + $0x48] sm:$0xff] %v1276_v16 }
  0x34   : > { %346 = vst [vmem:[#allocation2 + $0x40] sm:$0xff] %v1276_v16  ;;  %347 = vst [vmem:[#allocation2 + $0x20] sm:$0xff] %v1276_v16 }
  0x35   : > { %348 = vst [vmem:[#allocation2 + $0x10] sm:$0xff] %v1276_v16  ;;  %349 = vst [vmem:[#allocation2 + $0x38] sm:$0xff] %v1276_v16 }
  0x36   : > { %350 = vst [vmem:[#allocation2 + $0x60] sm:$0xff] %v1276_v16  ;;  %351 = vst [vmem:[#allocation2 + $0x70] sm:$0xff] %v1276_v16 }
  0x37   : > { %352 = vst [vmem:[#allocation2 + $0x78] sm:$0xff] %v1276_v16  ;;  %353 = vst [vmem:[#allocation2 + $0x28] sm:$0xff] %v1276_v16 }
  0x38 PF: > { %v401_v17 = vld [vmem:[%s1388_s29 + $0x78] sm:$0xff]  ;;  %v400_v18 = vld [vmem:[%s1388_s29 + $0x70] sm:$0xff]  ;;  %v399_v19 = vld [vmem:[%s1388_s29 + $0x68] sm:$0xff]  ;;  %p918_p13 = scmp.ne.s32.totalorder %s1258_s17, 1 }
  0x39   : > { %987 = vmatprep.subr.mxu0 %v401_v17  ;;  %1099 = vmatprep.subr.mxu1 %v401_v17  ;;  %v398_v20 = vld [vmem:[%s1388_s29 + $0x60] sm:$0xff]  ;;  %v397_v21 = vld [vmem:[%s1388_s29 + $0x58] sm:$0xff]  ;;  %v396_v22 = vld [vmem:[%s1388_s29 + $0x50] sm:$0xff] }
  0x3a   : > { %988 = vmatpush3.msra.mxu0 %v401_v17  ;;  %1115 = vmatpush3.msra.mxu1 %v401_v17  ;;  %v395_v23 = vld [vmem:[%s1388_s29 + $0x48] sm:$0xff]  ;;  %v394_v24 = vld [vmem:[%s1388_s29 + $0x40] sm:$0xff]  ;;  %v393_v25 = vld [vmem:[%s1388_s29 + $0x38] sm:$0xff] }
  0x3b   : > { %989 = vmatprep.subr.mxu0 %v400_v18  ;;  %1100 = vmatprep.subr.mxu1 %v400_v18  ;;  %v392_v26 = vld [vmem:[%s1388_s29 + $0x30] sm:$0xff]  ;;  %v391_v27 = vld [vmem:[%s1388_s29 + $0x28] sm:$0xff]  ;;  %v390_v28 = vld [vmem:[%s1388_s29 + $0x20] sm:$0xff] }
  0x3c   : > { %990 = vmatpush3.msra.mxu0 %v400_v18  ;;  %1116 = vmatpush3.msra.mxu1 %v400_v18  ;;  %v389_v29 = vld [vmem:[%s1388_s29 + $0x18] sm:$0xff]  ;;  %v388_v30 = vld [vmem:[%s1388_s29 + $0x10] sm:$0xff]  ;;  %v387_v31 = vld [vmem:[%s1388_s29 + $0x8] sm:$0xff] }
  0x3d   : > { %991 = vmatprep.subr.mxu0 %v399_v19  ;;  %1101 = vmatprep.subr.mxu1 %v399_v19  ;;  %v386_v32 = vld [vmem:[%s1388_s29] sm:$0xff]  ;;  %v371_v35 = vld [vmem:[%s1395_s15 + $0x8] sm:$0xff]  ;;  %v372_v37 = vld [vmem:[%s1395_s15 + $0x10] sm:$0xff] }
  0x3e   : > { %992 = vmatpush3.msra.mxu0 %v399_v19  ;;  %1117 = vmatpush3.msra.mxu1 %v399_v19  ;;  %v370_v33 = vld [vmem:[%s1395_s15] sm:$0xff]  ;;  %v379_v36 = vld [vmem:[%s1395_s15 + $0x48] sm:$0xff]  ;;  %v380_v38 = vld [vmem:[%s1395_s15 + $0x50] sm:$0xff] }
  0x3f   : > { %993 = vmatprep.subr.mxu0 %v398_v20  ;;  %1102 = vmatprep.subr.mxu1 %v398_v20  ;;  %v378_v34 = vld [vmem:[%s1395_s15 + $0x40] sm:$0xff]  ;;  %v373_v39 = vld [vmem:[%s1395_s15 + $0x18] sm:$0xff]  ;;  %v375_v43 = vld [vmem:[%s1395_s15 + $0x28] sm:$0xff] }
  0x40   : > { %994 = vmatpush3.msra.mxu0 %v398_v20  ;;  %1118 = vmatpush3.msra.mxu1 %v398_v20  ;;  %v381_v40 = vld [vmem:[%s1395_s15 + $0x58] sm:$0xff]  ;;  %v374_v41 = vld [vmem:[%s1395_s15 + $0x20] sm:$0xff]  ;;  %v383_v44 = vld [vmem:[%s1395_s15 + $0x68] sm:$0xff] }
  0x41   : > { %995 = vmatprep.subr.mxu0 %v397_v21  ;;  %1103 = vmatprep.subr.mxu1 %v397_v21  ;;  %v382_v42 = vld [vmem:[%s1395_s15 + $0x60] sm:$0xff]  ;;  %v376_v45 = vld [vmem:[%s1395_s15 + $0x30] sm:$0xff]  ;;  %v377_v47 = vld [vmem:[%s1395_s15 + $0x38] sm:$0xff] }
  0x42   : > { %996 = vmatpush3.msra.mxu0 %v397_v21  ;;  %1119 = vmatpush3.msra.mxu1 %v397_v21  ;;  %v384_v46 = vld [vmem:[%s1395_s15 + $0x70] sm:$0xff]  ;;  %v385_v48 = vld [vmem:[%s1395_s15 + $0x78] sm:$0xff]  ;;  %v355_v49 = vld [vmem:[#allocation2] sm:$0xff] }
  0x43   : > { %997 = vmatprep.subr.mxu0 %v396_v22  ;;  %1104 = vmatprep.subr.mxu1 %v396_v22  ;;  %v363_v50 = vld [vmem:[#allocation2 + $0x20] sm:$0xff]  ;;  %v354_v53 = vld [vmem:[#allocation2 + $0x30] sm:$0xff]  ;;  %v357_v59 = vld [vmem:[#allocation2 + $0x18] sm:$0xff] }
  0x44   : > { %998 = vmatpush3.msra.mxu0 %v396_v22  ;;  %1120 = vmatpush3.msra.mxu1 %v396_v22  ;;  %v362_v54 = vld [vmem:[#allocation2 + $0x40] sm:$0xff]  ;;  %v365_v60 = vld [vmem:[#allocation2 + $0x38] sm:$0xff]  ;;  %v364_v2 = vld [vmem:[#allocation2 + $0x10] sm:$0xff] }
  0x45   : > { %999 = vmatprep.subr.mxu0 %v395_v23  ;;  %1105 = vmatprep.subr.mxu1 %v395_v23  ;;  %v356_v1 = vld [vmem:[#allocation2 + $0x58] sm:$0xff]  ;;  %v359_v7 = vld [vmem:[#allocation2 + $0x68] sm:$0xff]  ;;  %v367_v8 = vld [vmem:[#allocation2 + $0x70] sm:$0xff] }
  0x46   : > { %1000 = vmatpush3.msra.mxu0 %v395_v23  ;;  %1121 = vmatpush3.msra.mxu1 %v395_v23  ;;  %v358_v13 = vld [vmem:[#allocation2 + $0x50] sm:$0xff]  ;;  %v366_v14 = vld [vmem:[#allocation2 + $0x60] sm:$0xff]  ;;  %v361_v19 = vld [vmem:[#allocation2 + $0x48] sm:$0xff] }
  0x47   : > { %1001 = vmatprep.subr.mxu0 %v394_v24  ;;  %1106 = vmatprep.subr.mxu1 %v394_v24  ;;  %v369_v20 = vld [vmem:[#allocation2 + $0x28] sm:$0xff] }
  0x48   : > { %1002 = vmatpush3.msra.mxu0 %v394_v24  ;;  %1122 = vmatpush3.msra.mxu1 %v394_v24 }
  0x49   : > { %1003 = vmatprep.subr.mxu0 %v393_v25  ;;  %1107 = vmatprep.subr.mxu1 %v393_v25 }
  0x4a   : > { %1004 = vmatpush3.msra.mxu0 %v393_v25  ;;  %1123 = vmatpush3.msra.mxu1 %v393_v25  ;;  %v360_v25 = vld [vmem:[#allocation2 + $0x8] sm:$0xff] }
  0x4b   : > { %1005 = vmatprep.subr.mxu0 %v392_v26  ;;  %1108 = vmatprep.subr.mxu1 %v392_v26 }
  0x4c   : > { %1006 = vmatpush3.msra.mxu0 %v392_v26  ;;  %1124 = vmatpush3.msra.mxu1 %v392_v26  ;;  %v368_v26 = vld [vmem:[#allocation2 + $0x78] sm:$0xff] }
  0x4d   : > { %1007 = vmatprep.subr.mxu0 %v391_v27  ;;  %1109 = vmatprep.subr.mxu1 %v391_v27 }
  0x4e   : > { %1008 = vmatpush3.msra.mxu0 %v391_v27  ;;  %1125 = vmatpush3.msra.mxu1 %v391_v27 }
  0x4f   : > { %1009 = vmatprep.subr.mxu0 %v390_v28  ;;  %1110 = vmatprep.subr.mxu1 %v390_v28 }
  0x50   : > { %1010 = vmatpush3.msra.mxu0 %v390_v28  ;;  %1126 = vmatpush3.msra.mxu1 %v390_v28 }
  0x51   : > { %1011 = vmatprep.subr.mxu0 %v389_v29  ;;  %1111 = vmatprep.subr.mxu1 %v389_v29 }
  0x52   : > { %1012 = vmatpush3.msra.mxu0 %v389_v29  ;;  %1127 = vmatpush3.msra.mxu1 %v389_v29 }
  0x53   : > { %1013 = vmatprep.subr.mxu0 %v388_v30  ;;  %1112 = vmatprep.subr.mxu1 %v388_v30 }
  0x54   : > { %1014 = vmatpush3.msra.mxu0 %v388_v30  ;;  %1128 = vmatpush3.msra.mxu1 %v388_v30 }
  0x55   : > { %1015 = vmatprep.subr.mxu0 %v387_v31  ;;  %1113 = vmatprep.subr.mxu1 %v387_v31 }
  0x56   : > { %1016 = vmatpush3.msra.mxu0 %v387_v31  ;;  %1129 = vmatpush3.msra.mxu1 %v387_v31 }
  0x57   : > { %1017 = vmatprep.subr.mxu0 %v386_v32  ;;  %1114 = vmatprep.subr.mxu1 %v386_v32 }
  0x58   : > { %1018 = vmatpush3.msra.mxu0 %v386_v32  ;;  %1130 = vmatpush3.msra.mxu1 %v386_v32 }
  0x59   : > { %1019 = vmatprep.mubr.f32.mxu0 %v370_v33  ;;  %1031 = vmatprep.mubr.f32.mxu1 %v378_v34 }
  0x5a   : > { %1020 = vmatmul.mubr.f32.vlgmr.msra.gmra.mxu0 %v371_v35  ;;  %1032 = vmatmul.mubr.f32.vlgmr.msra.gmra.mxu1 %v379_v36 }
  0x5b   : > { %1022 = vmatprep.mubr.f32.mxu0 %v372_v37  ;;  %1034 = vmatprep.mubr.f32.mxu1 %v380_v38 }
  0x5e   : > { %1023 = vmatmul.mubr.f32.gmra.mxu0 %v373_v39  ;;  %1035 = vmatmul.mubr.f32.gmra.mxu1 %v381_v40 }
  0x5f   : > { %1025 = vmatprep.mubr.f32.mxu0 %v374_v41  ;;  %1037 = vmatprep.mubr.f32.mxu1 %v382_v42 }
  0x62   : > { %1026 = vmatmul.mubr.f32.gmra.mxu0 %v375_v43  ;;  %1038 = vmatmul.mubr.f32.gmra.mxu1 %v383_v44 }
  0x63   : > { %1028 = vmatprep.mubr.f32.mxu0 %v376_v45  ;;  %1040 = vmatprep.mubr.f32.mxu1 %v384_v46 }
  0x66   : > { %1029 = vmatmul.mubr.f32.gmra.mxu0 %v377_v47  ;;  %1041 = vmatmul.mubr.f32.gmra.mxu1 %v385_v48 }
 0x11a   : > { %v1021_v51 = vpop.f32.mrf.mxu0  ;;  %v1033_v52 = vpop.f32.mrf.mxu1 }
 0x11b   : > { %v548_v55 = vadd.f32 %v1021_v51, %v355_v49  ;;  %v556_v56 = vadd.f32 %v1033_v52, %v363_v50 }
 0x11c   : > { %v468_v57 = vpop.f32.mrf.mxu0  ;;  %v508_v58 = vpop.f32.mrf.mxu1 }
 0x11d   : > { %564 = vst [vmem:[#allocation2] sm:$0xff] %v548_v55  ;;  %572 = vst [vmem:[#allocation2 + $0x20] sm:$0xff] %v556_v56  ;;  %v547_v61 = vadd.f32 %v468_v57, %v354_v53  ;;  %v555_v62 = vadd.f32 %v508_v58, %v362_v54 }
 0x11e   : > { %v1024_v63 = vpop.f32.mrf.mxu0  ;;  %v1036_v0 = vpop.f32.mrf.mxu1 }
 0x11f   : > { %563 = vst [vmem:[#allocation2 + $0x30] sm:$0xff] %v547_v61  ;;  %571 = vst [vmem:[#allocation2 + $0x40] sm:$0xff] %v555_v62  ;;  %v550_v3 = vadd.f32 %v1024_v63, %v357_v59  ;;  %v558_v4 = vadd.f32 %v1036_v0, %v365_v60 }
 0x120   : > { %v478_v5 = vpop.f32.mrf.mxu0  ;;  %v518_v6 = vpop.f32.mrf.mxu1 }
 0x121   : > { %566 = vst [vmem:[#allocation2 + $0x18] sm:$0xff] %v550_v3  ;;  %574 = vst [vmem:[#allocation2 + $0x38] sm:$0xff] %v558_v4  ;;  %v549_v9 = vadd.f32 %v478_v5, %v356_v1  ;;  %v557_v10 = vadd.f32 %v518_v6, %v364_v2 }
 0x122   : > { %v1027_v11 = vpop.f32.mrf.mxu0  ;;  %v1039_v12 = vpop.f32.mrf.mxu1 }
 0x123   : > { %565 = vst [vmem:[#allocation2 + $0x58] sm:$0xff] %v549_v9  ;;  %573 = vst [vmem:[#allocation2 + $0x10] sm:$0xff] %v557_v10  ;;  %v552_v15 = vadd.f32 %v1027_v11, %v359_v7  ;;  %v560_v16 = vadd.f32 %v1039_v12, %v367_v8 }
 0x124   : > { %v488_v17 = vpop.f32.mrf.mxu0  ;;  %v528_v18 = vpop.f32.mrf.mxu1 }
 0x125   : > { %568 = vst [vmem:[#allocation2 + $0x68] sm:$0xff] %v552_v15  ;;  %576 = vst [vmem:[#allocation2 + $0x70] sm:$0xff] %v560_v16  ;;  %v551_v21 = vadd.f32 %v488_v17, %v358_v13  ;;  %v559_v22 = vadd.f32 %v528_v18, %v366_v14 }
 0x126   : > { %v1030_v23 = vpop.f32.mrf.mxu0  ;;  %v1042_v24 = vpop.f32.mrf.mxu1 }
 0x127   : > { %567 = vst [vmem:[#allocation2 + $0x50] sm:$0xff] %v551_v21  ;;  %575 = vst [vmem:[#allocation2 + $0x60] sm:$0xff] %v559_v22  ;;  %v554_v27 = vadd.f32 %v1030_v23, %v361_v19  ;;  %v562_v28 = vadd.f32 %v1042_v24, %v369_v20  ;;  %582 = sbr.rel (%p918_p13) target bundleno = 542 (0x21e), region = 82 }
 0x128   : > { %v498_v29 = vpop.f32.mrf.mxu0  ;;  %v538_v30 = vpop.f32.mrf.mxu1 }
 0x129   : > { %570 = vst [vmem:[#allocation2 + $0x48] sm:$0xff] %v554_v27  ;;  %578 = vst [vmem:[#allocation2 + $0x28] sm:$0xff] %v562_v28  ;;  %v553_v31 = vadd.f32 %v498_v29, %v360_v25  ;;  %v561_v32 = vadd.f32 %v538_v30, %v368_v26 }
 0x12b   : > { %569 = vst [vmem:[#allocation2 + $0x8] sm:$0xff] %v553_v31  ;;  %577 = vst [vmem:[#allocation2 + $0x78] sm:$0xff] %v561_v32 }
 0x12c   : > { %v653_v33 = vld [vmem:[%s1540_s3 + $0x78] sm:$0xff]  ;;  %v652_v34 = vld [vmem:[%s1540_s3 + $0x70] sm:$0xff]  ;;  %v651_v35 = vld [vmem:[%s1540_s3 + $0x68] sm:$0xff] }
 0x12d   : > { %1043 = vmatprep.subr.mxu0 %v653_v33  ;;  %1131 = vmatprep.subr.mxu1 %v653_v33  ;;  %v650_v36 = vld [vmem:[%s1540_s3 + $0x60] sm:$0xff]  ;;  %v649_v37 = vld [vmem:[%s1540_s3 + $0x58] sm:$0xff]  ;;  %v648_v38 = vld [vmem:[%s1540_s3 + $0x50] sm:$0xff] }
 0x12e   : > { %1044 = vmatpush3.msra.mxu0 %v653_v33  ;;  %1147 = vmatpush3.msra.mxu1 %v653_v33  ;;  %v647_v39 = vld [vmem:[%s1540_s3 + $0x48] sm:$0xff]  ;;  %v646_v40 = vld [vmem:[%s1540_s3 + $0x40] sm:$0xff]  ;;  %v645_v41 = vld [vmem:[%s1540_s3 + $0x38] sm:$0xff] }
 0x12f   : > { %1045 = vmatprep.subr.mxu0 %v652_v34  ;;  %1132 = vmatprep.subr.mxu1 %v652_v34  ;;  %v644_v42 = vld [vmem:[%s1540_s3 + $0x30] sm:$0xff]  ;;  %v643_v43 = vld [vmem:[%s1540_s3 + $0x28] sm:$0xff]  ;;  %v642_v44 = vld [vmem:[%s1540_s3 + $0x20] sm:$0xff] }
 0x130   : > { %1046 = vmatpush3.msra.mxu0 %v652_v34  ;;  %1148 = vmatpush3.msra.mxu1 %v652_v34  ;;  %v641_v45 = vld [vmem:[%s1540_s3 + $0x18] sm:$0xff]  ;;  %v583_v46 = vld [vmem:[#allocation2 + $0x30] sm:$0xff]  ;;  %v1473_v47 = vld [vmem:[%s1539_s2] ss:$0 sm:$0xff] }
 0x131   : > { %1047 = vmatprep.subr.mxu0 %v651_v35  ;;  %1133 = vmatprep.subr.mxu1 %v651_v35  ;;  %v591_v48 = vld [vmem:[#allocation2 + $0x40] sm:$0xff]  ;;  %v640_v51 = vld [vmem:[%s1540_s3 + $0x10] sm:$0xff]  ;;  %v585_v52 = vld [vmem:[#allocation2 + $0x58] sm:$0xff]  ;;  %v606_v54 = vadd.f32 %v1473_v47, %v583_v46 }
 0x132   : > { %1048 = vmatpush3.msra.mxu0 %v651_v35  ;;  %1149 = vmatpush3.msra.mxu1 %v651_v35  ;;  %v584_v49 = vld [vmem:[#allocation2] sm:$0xff]  ;;  %v593_v53 = vld [vmem:[#allocation2 + $0x10] sm:$0xff]  ;;  %v614_v55 = vadd.f32 %v1473_v47, %v591_v48  ;;  %v639_v56 = vld [vmem:[%s1540_s3 + $0x8] sm:$0xff]  ;;  %v608_v59 = vadd.f32 %v1473_v47, %v585_v52 }
 0x133   : > { %1049 = vmatprep.subr.mxu0 %v650_v36  ;;  %1134 = vmatprep.subr.mxu1 %v650_v36  ;;  %v592_v50 = vld [vmem:[#allocation2 + $0x20] sm:$0xff]  ;;  %v607_v57 = vadd.f32 %v1473_v47, %v584_v49  ;;  %v616_v60 = vadd.f32 %v1473_v47, %v593_v53  ;;  %v586_v61 = vld [vmem:[#allocation2 + $0x18] sm:$0xff]  ;;  %v587_v0 = vld [vmem:[#allocation2 + $0x50] sm:$0xff]  ;;  %v622_v2 = vmax.f32 %v606_v54, 0.0 }
 0x134   : > { %1050 = vmatpush3.msra.mxu0 %v650_v36  ;;  %1150 = vmatpush3.msra.mxu1 %v650_v36  ;;  %v615_v58 = vadd.f32 %v1473_v47, %v592_v50  ;;  %v594_v62 = vld [vmem:[#allocation2 + $0x38] sm:$0xff]  ;;  %v638_v63 = vld [vmem:[%s1540_s3] sm:$0xff]  ;;  %v630_v3 = vmax.f32 %v614_v55, 0.0  ;;  %v609_v6 = vadd.f32 %v1473_v47, %v586_v61  ;;  %v624_v8 = vmax.f32 %v608_v59, 0.0  ;;  %v588_v12 = vld [vmem:[#allocation2 + $0x68] sm:$0xff] }
 0x135   : > { %1051 = vmatprep.subr.mxu0 %v649_v37  ;;  %1135 = vmatprep.subr.mxu1 %v649_v37  ;;  %v595_v1 = vld [vmem:[#allocation2 + $0x60] sm:$0xff]  ;;  %v623_v4 = vmax.f32 %v607_v57, 0.0  ;;  %v617_v7 = vadd.f32 %v1473_v47, %v594_v62  ;;  %v632_v9 = vmax.f32 %v616_v60, 0.0  ;;  %v610_v10 = vadd.f32 %v1473_v47, %v587_v0  ;;  %v596_v13 = vld [vmem:[#allocation2 + $0x70] sm:$0xff]  ;;  %v589_v14 = vld [vmem:[#allocation2 + $0x8] sm:$0xff] }
 0x136   : > { %1052 = vmatpush3.msra.mxu0 %v649_v37  ;;  %1151 = vmatpush3.msra.mxu1 %v649_v37  ;;  %v631_v5 = vmax.f32 %v615_v58, 0.0  ;;  %v618_v11 = vadd.f32 %v1473_v47, %v595_v1  ;;  %v597_v15 = vld [vmem:[#allocation2 + $0x78] sm:$0xff]  ;;  %v625_v16 = vmax.f32 %v609_v6, 0.0  ;;  %v611_v18 = vadd.f32 %v1473_v47, %v588_v12  ;;  %v590_v24 = vld [vmem:[#allocation2 + $0x48] sm:$0xff] }
 0x137   : > { %1053 = vmatprep.subr.mxu0 %v648_v38  ;;  %1136 = vmatprep.subr.mxu1 %v648_v38  ;;  %v633_v17 = vmax.f32 %v617_v7, 0.0  ;;  %v619_v19 = vadd.f32 %v1473_v47, %v596_v13  ;;  %v626_v20 = vmax.f32 %v610_v10, 0.0  ;;  %v612_v22 = vadd.f32 %v1473_v47, %v589_v14  ;;  %v598_v25 = vld [vmem:[#allocation2 + $0x28] sm:$0xff] }
 0x138   : > { %1054 = vmatpush3.msra.mxu0 %v648_v38  ;;  %1152 = vmatpush3.msra.mxu1 %v648_v38  ;;  %v634_v21 = vmax.f32 %v618_v11, 0.0  ;;  %v620_v23 = vadd.f32 %v1473_v47, %v597_v15  ;;  %v627_v26 = vmax.f32 %v611_v18, 0.0  ;;  %v613_v28 = vadd.f32 %v1473_v47, %v590_v24 }
 0x139   : > { %1055 = vmatprep.subr.mxu0 %v647_v39  ;;  %1137 = vmatprep.subr.mxu1 %v647_v39  ;;  %v635_v27 = vmax.f32 %v619_v19, 0.0  ;;  %v621_v29 = vadd.f32 %v1473_v47, %v598_v25  ;;  %v628_v30 = vmax.f32 %v612_v22, 0.0 }
 0x13a   : > { %1056 = vmatpush3.msra.mxu0 %v647_v39  ;;  %1153 = vmatpush3.msra.mxu1 %v647_v39  ;;  %v636_v31 = vmax.f32 %v620_v23, 0.0  ;;  %v629_v32 = vmax.f32 %v613_v28, 0.0 }
 0x13b   : > { %1057 = vmatprep.subr.mxu0 %v646_v40  ;;  %1138 = vmatprep.subr.mxu1 %v646_v40  ;;  %v637_v33 = vmax.f32 %v621_v29, 0.0 }
 0x13c   : > { %1058 = vmatpush3.msra.mxu0 %v646_v40  ;;  %1154 = vmatpush3.msra.mxu1 %v646_v40 }
 0x13d   : > { %1059 = vmatprep.subr.mxu0 %v645_v41  ;;  %1139 = vmatprep.subr.mxu1 %v645_v41 }
 0x13e   : > { %1060 = vmatpush3.msra.mxu0 %v645_v41  ;;  %1155 = vmatpush3.msra.mxu1 %v645_v41 }
 0x13f   : > { %1061 = vmatprep.subr.mxu0 %v644_v42  ;;  %1140 = vmatprep.subr.mxu1 %v644_v42 }
 0x140   : > { %1062 = vmatpush3.msra.mxu0 %v644_v42  ;;  %1156 = vmatpush3.msra.mxu1 %v644_v42 }
 0x141   : > { %1063 = vmatprep.subr.mxu0 %v643_v43  ;;  %1141 = vmatprep.subr.mxu1 %v643_v43 }
 0x142   : > { %1064 = vmatpush3.msra.mxu0 %v643_v43  ;;  %1157 = vmatpush3.msra.mxu1 %v643_v43 }
 0x143   : > { %1065 = vmatprep.subr.mxu0 %v642_v44  ;;  %1142 = vmatprep.subr.mxu1 %v642_v44 }
 0x144   : > { %1066 = vmatpush3.msra.mxu0 %v642_v44  ;;  %1158 = vmatpush3.msra.mxu1 %v642_v44 }
 0x145   : > { %1067 = vmatprep.subr.mxu0 %v641_v45  ;;  %1143 = vmatprep.subr.mxu1 %v641_v45 }
 0x146   : > { %1068 = vmatpush3.msra.mxu0 %v641_v45  ;;  %1159 = vmatpush3.msra.mxu1 %v641_v45 }
 0x147   : > { %1069 = vmatprep.subr.mxu0 %v640_v51  ;;  %1144 = vmatprep.subr.mxu1 %v640_v51 }
 0x148   : > { %1070 = vmatpush3.msra.mxu0 %v640_v51  ;;  %1160 = vmatpush3.msra.mxu1 %v640_v51 }
 0x149   : > { %1071 = vmatprep.subr.mxu0 %v639_v56  ;;  %1145 = vmatprep.subr.mxu1 %v639_v56 }
 0x14a   : > { %1072 = vmatpush3.msra.mxu0 %v639_v56  ;;  %1161 = vmatpush3.msra.mxu1 %v639_v56 }
 0x14b   : > { %1073 = vmatprep.subr.mxu0 %v638_v63  ;;  %1146 = vmatprep.subr.mxu1 %v638_v63 }
 0x14c   : > { %1074 = vmatpush3.msra.mxu0 %v638_v63  ;;  %1162 = vmatpush3.msra.mxu1 %v638_v63 }
 0x14d   : > { %1075 = vmatprep.mubr.f32.mxu0 %v622_v2  ;;  %1087 = vmatprep.mubr.f32.mxu1 %v630_v3 }
 0x14e   : > { %1076 = vmatmul.mubr.f32.vlgmr.msra.gmra.mxu0 %v623_v4  ;;  %1088 = vmatmul.mubr.f32.vlgmr.msra.gmra.mxu1 %v631_v5 }
 0x14f   : > { %1078 = vmatprep.mubr.f32.mxu0 %v624_v8  ;;  %1090 = vmatprep.mubr.f32.mxu1 %v632_v9 }
 0x152   : > { %1079 = vmatmul.mubr.f32.gmra.mxu0 %v625_v16  ;;  %1091 = vmatmul.mubr.f32.gmra.mxu1 %v633_v17 }
 0x153   : > { %1081 = vmatprep.mubr.f32.mxu0 %v626_v20  ;;  %1093 = vmatprep.mubr.f32.mxu1 %v634_v21 }
 0x156   : > { %1082 = vmatmul.mubr.f32.gmra.mxu0 %v627_v26  ;;  %1094 = vmatmul.mubr.f32.gmra.mxu1 %v635_v27 }
 0x157   : > { %1084 = vmatprep.mubr.f32.mxu0 %v628_v30  ;;  %1096 = vmatprep.mubr.f32.mxu1 %v636_v31 }
 0x15a   : > { %1085 = vmatmul.mubr.f32.gmra.mxu0 %v629_v32  ;;  %1097 = vmatmul.mubr.f32.gmra.mxu1 %v637_v33 }
 0x20e   : > { %v1077_v34 = vpop.f32.mrf.mxu0  ;;  %v1089_v35 = vpop.f32.mrf.mxu1 }
 0x20f   : > { %800 = vst [vmem:[%s1393_s7 + $0x8] sm:$0xff] %v1077_v34  ;;  %808 = vst [vmem:[%s1393_s7 + $0x48] sm:$0xff] %v1089_v35 }
 0x210   : > { %v720_v36 = vpop.f32.mrf.mxu0  ;;  %v760_v37 = vpop.f32.mrf.mxu1 }
 0x211   : > { %799 = vst [vmem:[%s1393_s7] sm:$0xff] %v720_v36  ;;  %807 = vst [vmem:[%s1393_s7 + $0x40] sm:$0xff] %v760_v37 }
 0x212   : > { %v1080_v38 = vpop.f32.mrf.mxu0  ;;  %v1092_v39 = vpop.f32.mrf.mxu1 }
 0x213   : > { %802 = vst [vmem:[%s1393_s7 + $0x18] sm:$0xff] %v1080_v38  ;;  %810 = vst [vmem:[%s1393_s7 + $0x58] sm:$0xff] %v1092_v39 }
 0x214   : > { %v730_v40 = vpop.f32.mrf.mxu0  ;;  %v770_v41 = vpop.f32.mrf.mxu1 }
 0x215   : > { %801 = vst [vmem:[%s1393_s7 + $0x10] sm:$0xff] %v730_v40  ;;  %809 = vst [vmem:[%s1393_s7 + $0x50] sm:$0xff] %v770_v41 }
 0x216   : > { %v1083_v42 = vpop.f32.mrf.mxu0  ;;  %v1095_v43 = vpop.f32.mrf.mxu1 }
 0x217   : > { %804 = vst [vmem:[%s1393_s7 + $0x28] sm:$0xff] %v1083_v42  ;;  %812 = vst [vmem:[%s1393_s7 + $0x68] sm:$0xff] %v1095_v43 }
 0x218   : > { %v740_v44 = vpop.f32.mrf.mxu0  ;;  %v780_v45 = vpop.f32.mrf.mxu1 }
 0x219   : > { %803 = vst [vmem:[%s1393_s7 + $0x20] sm:$0xff] %v740_v44  ;;  %811 = vst [vmem:[%s1393_s7 + $0x60] sm:$0xff] %v780_v45 }
 0x21a   : > { %v1086_v46 = vpop.f32.mrf.mxu0  ;;  %v1098_v47 = vpop.f32.mrf.mxu1 }
 0x21b   : > { %806 = vst [vmem:[%s1393_s7 + $0x38] sm:$0xff] %v1086_v46  ;;  %814 = vst [vmem:[%s1393_s7 + $0x78] sm:$0xff] %v1098_v47 }
 0x21c   : > { %v750_v48 = vpop.f32.mrf.mxu0  ;;  %v790_v49 = vpop.f32.mrf.mxu1 }
 0x21d   : > { %805 = vst [vmem:[%s1393_s7 + $0x30] sm:$0xff] %v750_v48  ;;  %813 = vst [vmem:[%s1393_s7 + $0x70] sm:$0xff] %v790_v49 }
 0x21e PF: > { %s14_s21 = sadd.s32 1, %s1274_s21   ;;  %s1542_s15 = smov %s1254_s16 }
 0x21f   : > { %p11_p0 = scmp.ge.s32.totalorder %s14_s21, 6   ;;  %s1543_s16 = smov %s1353_s28 }
 0x220   : > { %s1544_s17 = smov %s1266_s19  ;;  %s1545_s18 = smov %s1270_s20 }
 0x221   : > { %s1546_s19 = smov %s1549_s22  ;;  %s1547_s20 = smov %s1553_s23 }
 0x222   :  { %13 = sbr.rel (!%p11_p0) target bundleno = 4 (0x4), region = 120 }

// kernel: gcn_forward.3
= control target key start
LH: loop header
LB: loop body
LE: loop exit
PB: predicated region body
PF: predicated region fallthrough
CT: control target
= control target key end

     0   :  { %s973_s12 = smov 0   ;;  %s975_s13 = smov 0   ;;  %s1206_s0 = inlined_call_operand.vmem [shape: f32[256,256], index: 0, kind: input, shape index: {}]   ;;  %s1207_s1 = inlined_call_operand.vmem [shape: f32[256,128], index: 1, kind: input, shape index: {}]   ;;  %s1208_s2 = inlined_call_operand.vmem [shape: f32[1,128], index: 2, kind: input, shape index: {}]   ;;  %s1209_s3 = inlined_call_operand.vmem [shape: f32[256,128], index: 3, kind: output, shape index: {}]  }
   0x1   :  { %s977_s14 = smov 0   ;;  %s979_s15 = smov 0  }
   0x2   :  { %s981_s16 = smov 0   ;;  %s983_s17 = smov 0  }
   0x3   :  { %s985_s18 = smov 0  }
   0x4 LB: > { %s22_s19 = sadd.s32 1, %s942_s16  ;;  %s25_s20 = sadd.s32 1, %s946_s17  ;;  %s950_s18 = sphi %s985_s18, %s13_s18   ;;  %s946_s17 = sphi %s983_s17, %s1215_s17   ;;  %s942_s16 = sphi %s981_s16, %s1214_s16   ;;  %s938_s15 = sphi %s979_s15, %s1213_s15   ;;  %s934_s14 = sphi %s977_s14, %s1212_s14   ;;  %s930_s13 = sphi %s975_s13, %s1211_s13   ;;  %s926_s12 = sphi %s973_s12, %s1210_s12  }
   0x5   : > { %p23_p0 = scmp.ge.s32.totalorder %s22_s19, 2  ;;  %p41_p1 = scmp.ne.s32.totalorder %s930_s13, %s926_s12 }
   0x6   : > { %p42_p2 = scmp.eq.s32.totalorder %s950_s18, 0  ;;  %s34_s24 = sadd.s32 1, %s930_s13 }
   0x7   : > { %s1217_s19 = smov (%p23_p0, %s22_s19), 0  ;;  %s1219_s20 = smov (!%p23_p0, %s25_s20), %s946_s17 }
   0x8   : > { %p43_p3 = por %p42_p2, %p41_p1  ;;  %p27_p4 = scmp.ge.s32.totalorder %s1219_s20, 2 }
   0x9   : > { %s30_s21 = ssub.s32 %s942_s16, %s1217_s19  ;;  %p702_p6 = scmp.ge.s32.totalorder %s950_s18, 4 }
   0xa   : > { %s1221_s20 = smov (%p27_p4, %s1219_s20), 0 }
   0xb   : > { %s29_s22 = ssub.s32 %s946_s17, %s1221_s20  ;;  %143 = sbr.rel (%p702_p6) target bundleno = 30 (0x1e), region = 20 }
   0xc   : > { %s31_s23 = sor.u32 %s30_s21, %s29_s22 }
   0xd   : > { %p32_p5 = scmp.eq.s32.totalorder %s31_s23, 0 }
   0xf   : > { %s1024_s25 = scalar_select %p32_p5, %s930_s13, %s34_s24  }
  0x10   : > { %146 = sbr.rel (!%p43_p3) target bundleno = 30 (0x1e), region = 24  ;;  %s148_s26 = sand.u32 (%p43_p3), 1, %s930_s13  }
  0x11   : > { %s718_s27 = sshll.u32 (%p43_p3), %s946_s17, 5  ;;  %s703_s28 = sshll.u32 (%p43_p3), %s148_s26, 7 }
  0x12   : > { %s153_s29 = sadd.s32 (%p43_p3), %s942_s16, %s718_s27  ;;  %s150_s7 = scalar_lea.vmem (%p43_p3), [#allocation2], %s703_s28 }
  0x13   : > { %s706_s30 = sshll.u32 (%p43_p3), %s153_s29, 3 }
  0x14   : > { %s1033_s6 = scalar_lea.vmem (%p43_p3), %s1206_s0, %s706_s30 }
  0x15   : > { %v214_v0 = vld [vmem:[%s1033_s6] sm:$0xff]  ;;  %v216_v1 = vld [vmem:[%s1033_s6 + $0x10] sm:$0xff] }
  0x16   : > { %v218_v2 = vld [vmem:[%s1033_s6 + $0x20] sm:$0xff]  ;;  %215 = vst [vmem:[%s150_s7] sm:$0xff] %v214_v0  ;;  %217 = vst [vmem:[%s150_s7 + $0x8] sm:$0xff] %v216_v1  ;;  %v220_v3 = vld [vmem:[%s1033_s6 + $0x30] sm:$0xff] }
  0x17   : > { %219 = vst [vmem:[%s150_s7 + $0x10] sm:$0xff] %v218_v2  ;;  %v222_v4 = vld [vmem:[%s1033_s6 + $0x40] sm:$0xff]  ;;  %v224_v5 = vld [vmem:[%s1033_s6 + $0x50] sm:$0xff]  ;;  %221 = vst [vmem:[%s150_s7 + $0x18] sm:$0xff] %v220_v3 }
  0x18   : > { %223 = vst [vmem:[%s150_s7 + $0x20] sm:$0xff] %v222_v4  ;;  %225 = vst [vmem:[%s150_s7 + $0x28] sm:$0xff] %v224_v5  ;;  %v226_v6 = vld [vmem:[%s1033_s6 + $0x60] sm:$0xff]  ;;  %v228_v7 = vld [vmem:[%s1033_s6 + $0x70] sm:$0xff] }
  0x19   : > { %v230_v8 = vld [vmem:[%s1033_s6 + $0x80] sm:$0xff]  ;;  %227 = vst [vmem:[%s150_s7 + $0x30] sm:$0xff] %v226_v6  ;;  %229 = vst [vmem:[%s150_s7 + $0x38] sm:$0xff] %v228_v7  ;;  %v232_v9 = vld [vmem:[%s1033_s6 + $0x90] sm:$0xff] }
  0x1a   : > { %231 = vst [vmem:[%s150_s7 + $0x40] sm:$0xff] %v230_v8  ;;  %v234_v10 = vld [vmem:[%s1033_s6 + $0xa0] sm:$0xff]  ;;  %v236_v11 = vld [vmem:[%s1033_s6 + $0xb0] sm:$0xff]  ;;  %233 = vst [vmem:[%s150_s7 + $0x48] sm:$0xff] %v232_v9 }
  0x1b   : > { %235 = vst [vmem:[%s150_s7 + $0x50] sm:$0xff] %v234_v10  ;;  %237 = vst [vmem:[%s150_s7 + $0x58] sm:$0xff] %v236_v11  ;;  %v238_v12 = vld [vmem:[%s1033_s6 + $0xc0] sm:$0xff]  ;;  %v240_v13 = vld [vmem:[%s1033_s6 + $0xd0] sm:$0xff] }
  0x1c   : > { %v242_v14 = vld [vmem:[%s1033_s6 + $0xe0] sm:$0xff]  ;;  %239 = vst [vmem:[%s150_s7 + $0x60] sm:$0xff] %v238_v12  ;;  %241 = vst [vmem:[%s150_s7 + $0x68] sm:$0xff] %v240_v13  ;;  %v244_v15 = vld [vmem:[%s1033_s6 + $0xf0] sm:$0xff] }
  0x1d   : > { %243 = vst [vmem:[%s150_s7 + $0x70] sm:$0xff] %v242_v14  ;;  %245 = vst [vmem:[%s150_s7 + $0x78] sm:$0xff] %v244_v15 }
  0x1e PF: > { %p707_p7 = scmp.ge.s32.totalorder %s950_s18, 1  ;;  %p259_p8 = scmp.lt.s32.totalorder %s950_s18, 5 }
  0x20   : > { %p260_p9 = pnand %p707_p7, %p259_p8 }
  0x21   : > { %s266_s8 = sand.u32 (!%p260_p9), 1, %s926_s12   ;;  %s709_s9 = sshll.u32 (!%p260_p9), %s934_s14, 4 }
  0x22   : > { %263 = sbr.rel (%p260_p9) target bundleno = 312 (0x138), region = 66  ;;  %s708_s10 = sshll.u32 (!%p260_p9), %s266_s8, 7 }
  0x23   : > { %p296_p10 = scmp.lt.s32.totalorder (!%p260_p9), %s709_s9, 31  ;;  %s711_s11 = sshll.u32 (!%p260_p9), %s938_s15, 4 }
  0x24   : > { %p302_p11 = scmp.lt.s32.totalorder (!%p260_p9), %s711_s11, 31  ;;  %s1066_s12 = scalar_lea.vmem (!%p260_p9), [#allocation2], %s708_s10 }
  0x25   : > { %p713_p12 = scmp.ne.s32.totalorder (!%p260_p9), %s934_s14, 0 }
  0x27   : > { %s1223_s9 = smov (!%p296_p10, %s709_s9), 31  ;;  %s1225_s11 = smov (!%p302_p11, %s711_s11), 31 }
  0x28   : > { %s710_s21 = sshll.u32 %s1223_s9, 3  ;;  %s712_s26 = sshll.u32 %s1225_s11, 3 }
  0x29   : > { %s1059_s24 = scalar_lea.vmem %s1207_s1, %s710_s21  ;;  %s1064_s29 = scalar_lea.vmem %s1209_s3, %s712_s26 }
  0x2a   : > { %310 = sbr.rel (%p713_p12) target bundleno = 56 (0x38), region = 74 }
  0x2f   : > { %v952_v16 = vmov 0.0  }
  0x30   : > { %311 = vst [vmem:[%s1064_s29] sm:$0xff] %v952_v16  ;;  %312 = vst [vmem:[%s1064_s29 + $0x8] sm:$0xff] %v952_v16 }
  0x31   : > { %313 = vst [vmem:[%s1064_s29 + $0x10] sm:$0xff] %v952_v16  ;;  %314 = vst [vmem:[%s1064_s29 + $0x18] sm:$0xff] %v952_v16 }
  0x32   : > { %315 = vst [vmem:[%s1064_s29 + $0x20] sm:$0xff] %v952_v16  ;;  %316 = vst [vmem:[%s1064_s29 + $0x28] sm:$0xff] %v952_v16 }
  0x33   : > { %317 = vst [vmem:[%s1064_s29 + $0x30] sm:$0xff] %v952_v16  ;;  %318 = vst [vmem:[%s1064_s29 + $0x38] sm:$0xff] %v952_v16 }
  0x34   : > { %319 = vst [vmem:[%s1064_s29 + $0x40] sm:$0xff] %v952_v16  ;;  %320 = vst [vmem:[%s1064_s29 + $0x48] sm:$0xff] %v952_v16 }
  0x35   : > { %321 = vst [vmem:[%s1064_s29 + $0x50] sm:$0xff] %v952_v16  ;;  %322 = vst [vmem:[%s1064_s29 + $0x58] sm:$0xff] %v952_v16 }
  0x36   : > { %323 = vst [vmem:[%s1064_s29 + $0x60] sm:$0xff] %v952_v16  ;;  %324 = vst [vmem:[%s1064_s29 + $0x68] sm:$0xff] %v952_v16 }
  0x37   : > { %325 = vst [vmem:[%s1064_s29 + $0x70] sm:$0xff] %v952_v16  ;;  %326 = vst [vmem:[%s1064_s29 + $0x78] sm:$0xff] %v952_v16 }
  0x38 PF: > { %v374_v17 = vld [vmem:[%s1059_s24 + $0x78] sm:$0xff]  ;;  %v373_v18 = vld [vmem:[%s1059_s24 + $0x70] sm:$0xff]  ;;  %v372_v19 = vld [vmem:[%s1059_s24 + $0x68] sm:$0xff]  ;;  %p714_p13 = scmp.ne.s32.totalorder %s934_s14, 1 }
  0x39   : > { %751 = vmatprep.subr.mxu0 %v374_v17  ;;  %807 = vmatprep.subr.mxu1 %v374_v17  ;;  %v371_v20 = vld [vmem:[%s1059_s24 + $0x60] sm:$0xff]  ;;  %v370_v21 = vld [vmem:[%s1059_s24 + $0x58] sm:$0xff]  ;;  %v369_v22 = vld [vmem:[%s1059_s24 + $0x50] sm:$0xff] }
  0x3a   : > { %752 = vmatpush3.msra.mxu0 %v374_v17  ;;  %823 = vmatpush3.msra.mxu1 %v374_v17  ;;  %v368_v23 = vld [vmem:[%s1059_s24 + $0x48] sm:$0xff]  ;;  %v367_v24 = vld [vmem:[%s1059_s24 + $0x40] sm:$0xff]  ;;  %v366_v25 = vld [vmem:[%s1059_s24 + $0x38] sm:$0xff] }
  0x3b   : > { %753 = vmatprep.subr.mxu0 %v373_v18  ;;  %808 = vmatprep.subr.mxu1 %v373_v18  ;;  %v365_v26 = vld [vmem:[%s1059_s24 + $0x30] sm:$0xff]  ;;  %v364_v27 = vld [vmem:[%s1059_s24 + $0x28] sm:$0xff]  ;;  %v363_v28 = vld [vmem:[%s1059_s24 + $0x20] sm:$0xff] }
  0x3c   : > { %754 = vmatpush3.msra.mxu0 %v373_v18  ;;  %824 = vmatpush3.msra.mxu1 %v373_v18  ;;  %v362_v29 = vld [vmem:[%s1059_s24 + $0x18] sm:$0xff]  ;;  %v361_v30 = vld [vmem:[%s1059_s24 + $0x10] sm:$0xff]  ;;  %v360_v31 = vld [vmem:[%s1059_s24 + $0x8] sm:$0xff] }
  0x3d   : > { %755 = vmatprep.subr.mxu0 %v372_v19  ;;  %809 = vmatprep.subr.mxu1 %v372_v19  ;;  %v359_v32 = vld [vmem:[%s1059_s24] sm:$0xff]  ;;  %v344_v35 = vld [vmem:[%s1066_s12 + $0x8] sm:$0xff]  ;;  %v345_v37 = vld [vmem:[%s1066_s12 + $0x10] sm:$0xff] }
  0x3e   : > { %756 = vmatpush3.msra.mxu0 %v372_v19  ;;  %825 = vmatpush3.msra.mxu1 %v372_v19  ;;  %v343_v33 = vld [vmem:[%s1066_s12] sm:$0xff]  ;;  %v352_v36 = vld [vmem:[%s1066_s12 + $0x48] sm:$0xff]  ;;  %v353_v38 = vld [vmem:[%s1066_s12 + $0x50] sm:$0xff] }
  0x3f   : > { %757 = vmatprep.subr.mxu0 %v371_v20  ;;  %810 = vmatprep.subr.mxu1 %v371_v20  ;;  %v351_v34 = vld [vmem:[%s1066_s12 + $0x40] sm:$0xff]  ;;  %v346_v39 = vld [vmem:[%s1066_s12 + $0x18] sm:$0xff]  ;;  %v348_v43 = vld [vmem:[%s1066_s12 + $0x28] sm:$0xff] }
  0x40   : > { %758 = vmatpush3.msra.mxu0 %v371_v20  ;;  %826 = vmatpush3.msra.mxu1 %v371_v20  ;;  %v354_v40 = vld [vmem:[%s1066_s12 + $0x58] sm:$0xff]  ;;  %v347_v41 = vld [vmem:[%s1066_s12 + $0x20] sm:$0xff]  ;;  %v356_v44 = vld [vmem:[%s1066_s12 + $0x68] sm:$0xff] }
  0x41   : > { %759 = vmatprep.subr.mxu0 %v370_v21  ;;  %811 = vmatprep.subr.mxu1 %v370_v21  ;;  %v355_v42 = vld [vmem:[%s1066_s12 + $0x60] sm:$0xff]  ;;  %v349_v45 = vld [vmem:[%s1066_s12 + $0x30] sm:$0xff]  ;;  %v350_v47 = vld [vmem:[%s1066_s12 + $0x38] sm:$0xff] }
  0x42   : > { %760 = vmatpush3.msra.mxu0 %v370_v21  ;;  %827 = vmatpush3.msra.mxu1 %v370_v21  ;;  %v357_v46 = vld [vmem:[%s1066_s12 + $0x70] sm:$0xff]  ;;  %v358_v48 = vld [vmem:[%s1066_s12 + $0x78] sm:$0xff]  ;;  %v328_v49 = vld [vmem:[%s1064_s29 + $0x8] sm:$0xff] }
  0x43   : > { %761 = vmatprep.subr.mxu0 %v369_v22  ;;  %812 = vmatprep.subr.mxu1 %v369_v22  ;;  %v336_v50 = vld [vmem:[%s1064_s29 + $0x48] sm:$0xff]  ;;  %v327_v53 = vld [vmem:[%s1064_s29] sm:$0xff]  ;;  %v330_v59 = vld [vmem:[%s1064_s29 + $0x18] sm:$0xff] }
  0x44   : > { %762 = vmatpush3.msra.mxu0 %v369_v22  ;;  %828 = vmatpush3.msra.mxu1 %v369_v22  ;;  %v335_v54 = vld [vmem:[%s1064_s29 + $0x40] sm:$0xff]  ;;  %v338_v60 = vld [vmem:[%s1064_s29 + $0x58] sm:$0xff]  ;;  %v329_v1 = vld [vmem:[%s1064_s29 + $0x10] sm:$0xff] }
  0x45   : > { %763 = vmatprep.subr.mxu0 %v368_v23  ;;  %813 = vmatprep.subr.mxu1 %v368_v23  ;;  %v337_v2 = vld [vmem:[%s1064_s29 + $0x50] sm:$0xff]  ;;  %v332_v7 = vld [vmem:[%s1064_s29 + $0x28] sm:$0xff]  ;;  %v331_v13 = vld [vmem:[%s1064_s29 + $0x20] sm:$0xff] }
  0x46   : > { %764 = vmatpush3.msra.mxu0 %v368_v23  ;;  %829 = vmatpush3.msra.mxu1 %v368_v23  ;;  %v340_v8 = vld [vmem:[%s1064_s29 + $0x68] sm:$0xff]  ;;  %v339_v14 = vld [vmem:[%s1064_s29 + $0x60] sm:$0xff]  ;;  %v334_v19 = vld [vmem:[%s1064_s29 + $0x38] sm:$0xff] }
  0x47   : > { %765 = vmatprep.subr.mxu0 %v367_v24  ;;  %814 = vmatprep.subr.mxu1 %v367_v24  ;;  %v342_v20 = vld [vmem:[%s1064_s29 + $0x78] sm:$0xff] }
  0x48   : > { %766 = vmatpush3.msra.mxu0 %v367_v24  ;;  %830 = vmatpush3.msra.mxu1 %v367_v24 }
  0x49   : > { %767 = vmatprep.subr.mxu0 %v366_v25  ;;  %815 = vmatprep.subr.mxu1 %v366_v25 }
  0x4a   : > { %768 = vmatpush3.msra.mxu0 %v366_v25  ;;  %831 = vmatpush3.msra.mxu1 %v366_v25  ;;  %v333_v25 = vld [vmem:[%s1064_s29 + $0x30] sm:$0xff] }
  0x4b   : > { %769 = vmatprep.subr.mxu0 %v365_v26  ;;  %816 = vmatprep.subr.mxu1 %v365_v26 }
  0x4c   : > { %770 = vmatpush3.msra.mxu0 %v365_v26  ;;  %832 = vmatpush3.msra.mxu1 %v365_v26  ;;  %v341_v26 = vld [vmem:[%s1064_s29 + $0x70] sm:$0xff] }
  0x4d   : > { %771 = vmatprep.subr.mxu0 %v364_v27  ;;  %817 = vmatprep.subr.mxu1 %v364_v27 }
  0x4e   : > { %772 = vmatpush3.msra.mxu0 %v364_v27  ;;  %833 = vmatpush3.msra.mxu1 %v364_v27 }
  0x4f   : > { %773 = vmatprep.subr.mxu0 %v363_v28  ;;  %818 = vmatprep.subr.mxu1 %v363_v28 }
  0x50   : > { %774 = vmatpush3.msra.mxu0 %v363_v28  ;;  %834 = vmatpush3.msra.mxu1 %v363_v28 }
  0x51   : > { %775 = vmatprep.subr.mxu0 %v362_v29  ;;  %819 = vmatprep.subr.mxu1 %v362_v29 }
  0x52   : > { %776 = vmatpush3.msra.mxu0 %v362_v29  ;;  %835 = vmatpush3.msra.mxu1 %v362_v29 }
  0x53   : > { %777 = vmatprep.subr.mxu0 %v361_v30  ;;  %820 = vmatprep.subr.mxu1 %v361_v30 }
  0x54   : > { %778 = vmatpush3.msra.mxu0 %v361_v30  ;;  %836 = vmatpush3.msra.mxu1 %v361_v30 }
  0x55   : > { %779 = vmatprep.subr.mxu0 %v360_v31  ;;  %821 = vmatprep.subr.mxu1 %v360_v31 }
  0x56   : > { %780 = vmatpush3.msra.mxu0 %v360_v31  ;;  %837 = vmatpush3.msra.mxu1 %v360_v31 }
  0x57   : > { %781 = vmatprep.subr.mxu0 %v359_v32  ;;  %822 = vmatprep.subr.mxu1 %v359_v32 }
  0x58   : > { %782 = vmatpush3.msra.mxu0 %v359_v32  ;;  %838 = vmatpush3.msra.mxu1 %v359_v32 }
  0x59   : > { %783 = vmatprep.mubr.f32.mxu0 %v343_v33  ;;  %795 = vmatprep.mubr.f32.mxu1 %v351_v34 }
  0x5a   : > { %784 = vmatmul.mubr.f32.vlgmr.msra.gmra.mxu0 %v344_v35  ;;  %796 = vmatmul.mubr.f32.vlgmr.msra.gmra.mxu1 %v352_v36 }
  0x5b   : > { %786 = vmatprep.mubr.f32.mxu0 %v345_v37  ;;  %798 = vmatprep.mubr.f32.mxu1 %v353_v38 }
  0x5e   : > { %787 = vmatmul.mubr.f32.gmra.mxu0 %v346_v39  ;;  %799 = vmatmul.mubr.f32.gmra.mxu1 %v354_v40 }
  0x5f   : > { %789 = vmatprep.mubr.f32.mxu0 %v347_v41  ;;  %801 = vmatprep.mubr.f32.mxu1 %v355_v42 }
  0x62   : > { %790 = vmatmul.mubr.f32.gmra.mxu0 %v348_v43  ;;  %802 = vmatmul.mubr.f32.gmra.mxu1 %v356_v44 }
  0x63   : > { %792 = vmatprep.mubr.f32.mxu0 %v349_v45  ;;  %804 = vmatprep.mubr.f32.mxu1 %v357_v46 }
  0x66   : > { %793 = vmatmul.mubr.f32.gmra.mxu0 %v350_v47  ;;  %805 = vmatmul.mubr.f32.gmra.mxu1 %v358_v48 }
 0x11a   : > { %v785_v51 = vpop.f32.mrf.mxu0  ;;  %v797_v52 = vpop.f32.mrf.mxu1 }
 0x11b   : > { %v521_v55 = vadd.f32 %v785_v51, %v328_v49  ;;  %v529_v56 = vadd.f32 %v797_v52, %v336_v50 }
 0x11c   : > { %v441_v57 = vpop.f32.mrf.mxu0  ;;  %v481_v58 = vpop.f32.mrf.mxu1 }
 0x11d   : > { %537 = vst [vmem:[%s1064_s29 + $0x8] sm:$0xff] %v521_v55  ;;  %545 = vst [vmem:[%s1064_s29 + $0x48] sm:$0xff] %v529_v56  ;;  %v520_v61 = vadd.f32 %v441_v57, %v327_v53  ;;  %v528_v62 = vadd.f32 %v481_v58, %v335_v54 }
 0x11e   : > { %v788_v63 = vpop.f32.mrf.mxu0  ;;  %v800_v0 = vpop.f32.mrf.mxu1 }
 0x11f   : > { %536 = vst [vmem:[%s1064_s29] sm:$0xff] %v520_v61  ;;  %544 = vst [vmem:[%s1064_s29 + $0x40] sm:$0xff] %v528_v62  ;;  %v523_v3 = vadd.f32 %v788_v63, %v330_v59  ;;  %v531_v4 = vadd.f32 %v800_v0, %v338_v60 }
 0x120   : > { %v451_v5 = vpop.f32.mrf.mxu0  ;;  %v491_v6 = vpop.f32.mrf.mxu1 }
 0x121   : > { %539 = vst [vmem:[%s1064_s29 + $0x18] sm:$0xff] %v523_v3  ;;  %547 = vst [vmem:[%s1064_s29 + $0x58] sm:$0xff] %v531_v4  ;;  %v522_v9 = vadd.f32 %v451_v5, %v329_v1  ;;  %v530_v10 = vadd.f32 %v491_v6, %v337_v2 }
 0x122   : > { %v791_v11 = vpop.f32.mrf.mxu0  ;;  %v803_v12 = vpop.f32.mrf.mxu1 }
 0x123   : > { %538 = vst [vmem:[%s1064_s29 + $0x10] sm:$0xff] %v522_v9  ;;  %546 = vst [vmem:[%s1064_s29 + $0x50] sm:$0xff] %v530_v10  ;;  %v525_v15 = vadd.f32 %v791_v11, %v332_v7  ;;  %v533_v16 = vadd.f32 %v803_v12, %v340_v8 }
 0x124   : > { %v461_v17 = vpop.f32.mrf.mxu0  ;;  %v501_v18 = vpop.f32.mrf.mxu1 }
 0x125   : > { %541 = vst [vmem:[%s1064_s29 + $0x28] sm:$0xff] %v525_v15  ;;  %549 = vst [vmem:[%s1064_s29 + $0x68] sm:$0xff] %v533_v16  ;;  %v524_v21 = vadd.f32 %v461_v17, %v331_v13  ;;  %v532_v22 = vadd.f32 %v501_v18, %v339_v14 }
 0x126   : > { %v794_v23 = vpop.f32.mrf.mxu0  ;;  %v806_v24 = vpop.f32.mrf.mxu1 }
 0x127   : > { %540 = vst [vmem:[%s1064_s29 + $0x20] sm:$0xff] %v524_v21  ;;  %548 = vst [vmem:[%s1064_s29 + $0x60] sm:$0xff] %v532_v22  ;;  %v527_v27 = vadd.f32 %v794_v23, %v334_v19  ;;  %v535_v28 = vadd.f32 %v806_v24, %v342_v20  ;;  %555 = sbr.rel (%p714_p13) target bundleno = 312 (0x138), region = 78 }
 0x128   : > { %v471_v29 = vpop.f32.mrf.mxu0  ;;  %v511_v30 = vpop.f32.mrf.mxu1 }
 0x129   : > { %543 = vst [vmem:[%s1064_s29 + $0x38] sm:$0xff] %v527_v27  ;;  %551 = vst [vmem:[%s1064_s29 + $0x78] sm:$0xff] %v535_v28  ;;  %v526_v31 = vadd.f32 %v471_v29, %v333_v25  ;;  %v534_v32 = vadd.f32 %v511_v30, %v341_v26 }
 0x12b   : > { %542 = vst [vmem:[%s1064_s29 + $0x30] sm:$0xff] %v526_v31  ;;  %550 = vst [vmem:[%s1064_s29 + $0x70] sm:$0xff] %v534_v32 }
 0x12c   : > { %v556_v33 = vld [vmem:[%s1064_s29] sm:$0xff]  ;;  %v557_v35 = vld [vmem:[%s1064_s29 + $0x8] sm:$0xff]  ;;  %v558_v38 = vld [vmem:[%s1064_s29 + $0x10] sm:$0xff] }
 0x12d   : > { %v715_v34 = vld [vmem:[%s1208_s2] ss:$0 sm:$0xff]  ;;  %v559_v39 = vld [vmem:[%s1064_s29 + $0x18] sm:$0xff]  ;;  %v561_v44 = vld [vmem:[%s1064_s29 + $0x28] sm:$0xff] }
 0x12e   : > { %v579_v36 = vadd.f32 %v715_v34, %v556_v33  ;;  %v580_v37 = vadd.f32 %v715_v34, %v557_v35  ;;  %v560_v40 = vld [vmem:[%s1064_s29 + $0x20] sm:$0xff]  ;;  %v581_v41 = vadd.f32 %v715_v34, %v558_v38  ;;  %v582_v42 = vadd.f32 %v715_v34, %v559_v39  ;;  %v565_v51 = vld [vmem:[%s1064_s29 + $0x48] sm:$0xff]  ;;  %v566_v52 = vld [vmem:[%s1064_s29 + $0x50] sm:$0xff] }
 0x12f   : > { %v583_v43 = vadd.f32 %v715_v34, %v560_v40  ;;  %v584_v47 = vadd.f32 %v715_v34, %v561_v44  ;;  %v564_v50 = vld [vmem:[%s1064_s29 + $0x40] sm:$0xff]  ;;  %v588_v54 = vadd.f32 %v715_v34, %v565_v51  ;;  %v589_v55 = vadd.f32 %v715_v34, %v566_v52  ;;  %v567_v56 = vld [vmem:[%s1064_s29 + $0x58] sm:$0xff]  ;;  %v569_v58 = vld [vmem:[%s1064_s29 + $0x68] sm:$0xff] }
 0x130   : > { %v563_v46 = vld [vmem:[%s1064_s29 + $0x38] sm:$0xff]  ;;  %595 = vst [vmem:[%s1064_s29] sm:$0xff] %v579_v36  ;;  %596 = vst [vmem:[%s1064_s29 + $0x8] sm:$0xff] %v580_v37  ;;  %v587_v53 = vadd.f32 %v715_v34, %v564_v50  ;;  %v568_v57 = vld [vmem:[%s1064_s29 + $0x60] sm:$0xff]  ;;  %v590_v59 = vadd.f32 %v715_v34, %v567_v56  ;;  %v592_v61 = vadd.f32 %v715_v34, %v569_v58 }
 0x131   : > { %v586_v49 = vadd.f32 %v715_v34, %v563_v46  ;;  %597 = vst [vmem:[%s1064_s29 + $0x10] sm:$0xff] %v581_v41  ;;  %598 = vst [vmem:[%s1064_s29 + $0x18] sm:$0xff] %v582_v42  ;;  %v591_v60 = vadd.f32 %v715_v34, %v568_v57  ;;  %v571_v63 = vld [vmem:[%s1064_s29 + $0x78] sm:$0xff] }
 0x132   : > { %v562_v45 = vld [vmem:[%s1064_s29 + $0x30] sm:$0xff]  ;;  %599 = vst [vmem:[%s1064_s29 + $0x20] sm:$0xff] %v583_v43  ;;  %600 = vst [vmem:[%s1064_s29 + $0x28] sm:$0xff] %v584_v47  ;;  %v594_v1 = vadd.f32 %v715_v34, %v571_v63 }
 0x133   : > { %v585_v48 = vadd.f32 %v715_v34, %v562_v45  ;;  %602 = vst [vmem:[%s1064_s29 + $0x38] sm:$0xff] %v586_v49  ;;  %v570_v62 = vld [vmem:[%s1064_s29 + $0x70] sm:$0xff]  ;;  %603 = vst [vmem:[%s1064_s29 + $0x40] sm:$0xff] %v587_v53 }
 0x134   : > { %604 = vst [vmem:[%s1064_s29 + $0x48] sm:$0xff] %v588_v54  ;;  %605 = vst [vmem:[%s1064_s29 + $0x50] sm:$0xff] %v589_v55  ;;  %v593_v0 = vadd.f32 %v715_v34, %v570_v62 }
 0x135   : > { %601 = vst [vmem:[%s1064_s29 + $0x30] sm:$0xff] %v585_v48  ;;  %606 = vst [vmem:[%s1064_s29 + $0x58] sm:$0xff] %v590_v59 }
 0x136   : > { %607 = vst [vmem:[%s1064_s29 + $0x60] sm:$0xff] %v591_v60  ;;  %608 = vst [vmem:[%s1064_s29 + $0x68] sm:$0xff] %v592_v61 }
 0x137   : > { %609 = vst [vmem:[%s1064_s29 + $0x70] sm:$0xff] %v593_v0  ;;  %610 = vst [vmem:[%s1064_s29 + $0x78] sm:$0xff] %v594_v1 }
 0x138 PF: > { %s13_s18 = sadd.s32 1, %s950_s18   ;;  %s1210_s12 = smov %s930_s13 }
 0x139   : > { %p10_p0 = scmp.ge.s32.totalorder %s13_s18, 6   ;;  %s1211_s13 = smov %s1024_s25 }
 0x13a   : > { %s1212_s14 = smov %s942_s16  ;;  %s1213_s15 = smov %s946_s17 }
 0x13b   : > { %s1214_s16 = smov %s1217_s19  ;;  %s1215_s17 = smov %s1221_s20 }
 0x13c   :  { %12 = sbr.rel (!%p10_p0) target bundleno = 4 (0x4), region = 116 }

</bundles_post_ra>
